<compile_context>
chip_gen: v5e
topology: v5e:2x2
jax: 0.10.0
libtpu: 0.0.40
codegen_flags: <defaults>
</compile_context>

<pallas_src>
import functools
import math

import jax
import jax.numpy as jnp
from jax.experimental import pallas as pl
from jax.experimental.pallas import tpu as pltpu


def _clipped_hardtanh_kernel(x_ref, o_ref, *, scale, inv_scale, dequantize):
    x = x_ref[...].astype(jnp.float32)
    # hardtanh: clip to [-1, 1]
    x = jnp.clip(x, -1.0, 1.0)
    # symmetric linear quantize (zero_point == 0); jnp.round matches torch.round
    # (round-half-to-even) semantics.
    q = jnp.round(x * scale)
    if dequantize:
        # Reciprocal multiply instead of divide: keeps the VPU slot light so the
        # kernel remains HBM/DMA-bound on v7x.
        q = q * inv_scale
    o_ref[...] = q.astype(o_ref.dtype)


def _choose_lane(total):
    """Widest lane count (multiple of 128) that divides `total`, or 0 if none."""
    for lane in (2048, 1024, 512, 256, 128):
        if total % lane == 0:
            return lane
    return 0


def _tpu_gen_params():
    """Return (target_block_bytes, vmem_limit_bytes), generation-aware.

    v7x-class chips have 64 MiB physical VMEM per TensorCore and ~3.2 TB/s HBM,
    so bigger blocks amortize per-grid-step overhead.  Fallback values are safe
    on every generation.
    """
    try:
        info = pltpu.get_tpu_info()
        vmem_cap = int(info.vmem_capacity_bytes)
        if vmem_cap <= 64 * 1024 * 1024:
            # v7x-like: 8 MiB blocks -> pipelined footprint 2 bufs x (in+out) = 32 MiB.
            return 8 * 1024 * 1024, 48 * 1024 * 1024
    except Exception:
        pass
    return 4 * 1024 * 1024, 32 * 1024 * 1024


class ClippedHardTanhPallas:
    """JAX/Pallas port of ClippedHardTanh."""

    def __init__(self, num_bits, alpha=8.0, inplace=False, dequantize=True):
        # alpha is a learnable parameter in the torch module; unused in forward.
        self.alpha = jnp.array([alpha], dtype=jnp.float32)
        self.num_bits = int(num_bits)
        self.inplace = inplace
        self.dequantize = dequantize
        # symmetric_linear_quantization_params(num_bits, sat=1.0, restrict_qrange=False)
        self.scale = (2.0 ** self.num_bits - 1.0) / 2.0
        self.inv_scale = 1.0 / self.scale
        self.zero_point = 0.0
        self._target_block_bytes, self._vmem_limit_bytes = _tpu_gen_params()

    # ---- plain-jnp fallback (tiny tensors and ragged tails) -----------------
    def _jnp_forward(self, x):
        xf = jnp.clip(x.astype(jnp.float32), -1.0, 1.0)
        q = jnp.round(xf * self.scale)
        if self.dequantize:
            q = q * self.inv_scale
        return q.astype(x.dtype)

    # ---- Pallas path on a lane-dense (rows, lane) view ----------------------
    def _pallas_2d(self, x2d):
        rows, lane = x2d.shape
        dtype = x2d.dtype
        itemsize = jnp.dtype(dtype).itemsize

        # Target block bytes -> rows per block (multiple of 8 sublanes).
        block_rows = max(8, (self._target_block_bytes // (lane * itemsize)) // 8 * 8)
        if rows >= 16:
            # Force >= 2 grid programs so both v7x TensorCores stream
            # (half the rows, rounded up to a sublane multiple; <= rows by construction).
            half = ((-(-rows // 2)) + 7) // 8 * 8
            block_rows = min(block_rows, half)
        else:
            # Single block; block_shape equal to the full dim is always legal
            # (covers rows < 8 or rows not a multiple of 8).
            block_rows = rows

        grid = (pl.cdiv(rows, block_rows),)

        kernel = functools.partial(
            _clipped_hardtanh_kernel,
            scale=self.scale,
            inv_scale=self.inv_scale,
            dequantize=self.dequantize,
        )

        call_kwargs = {}
        if self.inplace:
            # Let XLA reuse / donate the input buffer for the output.
            call_kwargs["input_output_aliases"] = {0: 0}

        return pl.pallas_call(
            kernel,
            out_shape=jax.ShapeDtypeStruct((rows, lane), dtype),
            grid=grid,
            in_specs=[pl.BlockSpec((block_rows, lane), lambda i: (i, 0))],
            out_specs=pl.BlockSpec((block_rows, lane), lambda i: (i, 0)),
            compiler_params=pltpu.CompilerParams(
                dimension_semantics=("parallel",),
                vmem_limit_bytes=self._vmem_limit_bytes,
            ),
            **call_kwargs,
        )(x2d)

    def __call__(self, x):
        orig_shape = x.shape
        total = int(math.prod(orig_shape)) if orig_shape else 1
        if total == 0:
            return x

        flat = x.reshape(-1)

        # 128-divisible prefix goes through Pallas; the (<128 element) tail is plain jnp.
        prefix = (total // 128) * 128
        tail = total - prefix

        if prefix == 0:
            # Tiny tensor: not worth a kernel launch.
            return self._jnp_forward(flat).reshape(orig_shape)

        lane = _choose_lane(prefix)
        rows = prefix // lane

        if tail:
            x2d = flat[:prefix].reshape(rows, lane)
            out_prefix = self._pallas_2d(x2d).reshape(-1)
            out_tail = self._jnp_forward(flat[prefix:])
            out = jnp.concatenate([out_prefix, out_tail])
        else:
            out = self._pallas_2d(flat.reshape(rows, lane)).reshape(-1)

        return out.reshape(orig_shape)


def _reference(x, num_bits, dequantize=True):
    """Pure-JAX reference of the torch forward pass (uses exact division)."""
    scale = (2.0 ** num_bits - 1.0) / 2.0
    xc = jnp.clip(x, -1.0, 1.0)
    q = jnp.round(xc * scale)
    return q / scale if dequantize else q


if __name__ == "__main__":
    key = jax.random.PRNGKey(0)
    module = ClippedHardTanhPallas(num_bits=4, alpha=8.0)

    # 1) NCHW activation, element count a multiple of 128 (lane-dense, single block).
    x = jax.random.normal(key, (2, 4, 16, 16), dtype=jnp.float32) * 2.0
    out = jax.block_until_ready(module(x))
    ref = _reference(x, num_bits=4)
    assert out.shape == x.shape and out.dtype == x.dtype
    assert jnp.allclose(out, ref, atol=1e-6), "mismatch vs reference (NCHW)"

    # 2) Larger activation -> multi-program grid (both v7x TensorCores get work).
    k1, k2 = jax.random.split(key)
    xb = jax.random.normal(k1, (8, 64, 32, 32), dtype=jnp.float32) * 2.0
    outb = jax.block_until_ready(module(xb))
    refb = _reference(xb, num_bits=4)
    assert jnp.allclose(outb, refb, atol=1e-6), "mismatch vs reference (multi-block)"

    # 3) Ragged element count -> Pallas prefix + jnp tail (no pad/slice round trips).
    xr = jax.random.normal(k2, (5, 7, 37), dtype=jnp.float32) * 2.0
    outr = jax.block_until_ready(module(xr))
    refr = _reference(xr, num_bits=4)
    assert outr.shape == xr.shape and outr.dtype == xr.dtype
    assert jnp.allclose(outr, refr, atol=1e-6), "mismatch vs reference (ragged)"

    # 4) Tiny tensor (< 128 elements) -> pure jnp fallback path.
    xt = jax.random.normal(key, (3, 5, 7), dtype=jnp.float32) * 2.0
    outt = jax.block_until_ready(module(xt))
    reft = _reference(xt, num_bits=4)
    assert jnp.allclose(outt, reft, atol=1e-6), "mismatch vs reference (tiny)"

    print("KERNEL_OK")
</pallas_src>

<mosaic_0001>
module attributes {stable_mosaic.version = 11 : i64} {
  func.func @_clipped_hardtanh_kernel(%arg0: i32, %arg1: memref<1x2048xf32, #tpu.memory_space<vmem>>, %arg2: memref<1x2048xf32, #tpu.memory_space<vmem>>) attributes {dimension_semantics = [#tpu.dimension_semantics<parallel>], iteration_bounds = array<i64: 1>, scalar_prefetch = 0 : i64, scratch_operands = 0 : i64, tpu.core_type = #tpu.core_type<tc>, window_params = [{transform_indices = @transform_0, window_bounds = array<i64: 1, 2048>}, {transform_indices = @transform_1, window_bounds = array<i64: 1, 2048>}]} {
    %c0 = arith.constant 0 : index
    %c0_0 = arith.constant 0 : index
    %0 = vector.load %arg1[%c0, %c0_0] : memref<1x2048xf32, #tpu.memory_space<vmem>>, vector<1x2048xf32>
    %cst = arith.constant -1.000000e+00 : f32
    %cst_1 = arith.constant 1.000000e+00 : f32
    %1 = vector.broadcast %cst : f32 to vector<1x2048xf32>
    %2 = arith.maximumf %1, %0 : vector<1x2048xf32>
    %3 = vector.broadcast %cst_1 : f32 to vector<1x2048xf32>
    %4 = arith.minimumf %3, %2 : vector<1x2048xf32>
    %cst_2 = arith.constant 7.500000e+00 : f32
    %5 = vector.broadcast %cst_2 : f32 to vector<1x2048xf32>
    %6 = arith.mulf %4, %5 : vector<1x2048xf32>
    %7 = math.roundeven %6 : vector<1x2048xf32>
    %cst_3 = arith.constant 0.13333334 : f32
    %8 = vector.broadcast %cst_3 : f32 to vector<1x2048xf32>
    %9 = arith.mulf %7, %8 : vector<1x2048xf32>
    %c0_4 = arith.constant 0 : index
    %c0_5 = arith.constant 0 : index
    %10 = vector.load %arg2[%c0_4, %c0_5] : memref<1x2048xf32, #tpu.memory_space<vmem>>, vector<1x2048xf32>
    tpu.vector_store %arg2[%c0_4, %c0_5], %9 {strides = array<i32>} : memref<1x2048xf32, #tpu.memory_space<vmem>>, vector<1x2048xf32>,
    return
  }
  func.func @transform_0(%arg0: i32) -> (i32, i32) {
    %c0_i32 = arith.constant 0 : i32
    %c0_i32_0 = arith.constant 0 : i32
    return %arg0, %c0_i32 : i32, i32
  }
  func.func @transform_1(%arg0: i32) -> (i32, i32) {
    %c0_i32 = arith.constant 0 : i32
    %c0_i32_0 = arith.constant 0 : i32
    return %arg0, %c0_i32 : i32, i32
  }
}

</mosaic_0001>

<bundles_post_ra>
// kernel: tpu_custom_call.1
= control target key start
LH: loop header
LB: loop body
LE: loop exit
PB: predicated region body
PF: predicated region fallthrough
CT: control target
= control target key end

     0   :  { %6 = vsyncpa [#allocation3], 0  ;;  %s144_s0 = inlined_call_operand.hbm [shape: f32[1,2048], index: 0, kind: input, shape index: {}]   ;;  %s145_s1 = inlined_call_operand.hbm [shape: f32[1,2048], index: 1, kind: output, shape index: {}]  }
   0x1   :  { %7 = vsyncpa [#allocation4], 0  ;;  %s13_s8 = sshll.u32 %s144_s0, 4  ;;  %s126_s9 = smov [#allocation2]   ;;  %s14_s8 = int_to_ptr.hbm [resolvable:$true] %s13_s8 }
   0x2   :  { %s15_s10 = sshll.u32 %s126_s9, 4  ;;  %s16_s10 = int_to_ptr.vmem [resolvable:$true] %s15_s10 }
   0x3   :  { %18 = dma.hbm_to_vmem [thread:$0]  %s14_s8, 256, %s16_s10, [#allocation3]  }
   0x4   :  { %122 = dma.done.wait [#allocation3], 256  }
   0x5   :  { %123 = vsyncadd [#allocation3], 4294967040  ;;  %v23_v0 = vld [vmem:[#allocation2] sm:$0xff]  ;;  %v24_v1 = vld [vmem:[#allocation2 + $0x8] sm:$0xff]  ;;  %s127_s0 = smov [#allocation5]   ;;  %s44_s14 = sshll.u32 %s145_s1, 4  ;;  %s45_s14 = int_to_ptr.hbm [resolvable:$true] %s44_s14 }
   0x6   :  { %v54_v2 = vclamps-f32 %v23_v0, 1.0  ;;  %v55_v3 = vclamps-f32 %v24_v1, 1.0  ;;  %s42_s11 = sshll.u32 %s127_s0, 4  ;;  %s43_s11 = int_to_ptr.vmem [resolvable:$true] %s42_s11 }
   0x8   :  { %v29_v4 = vmul.f32 7.5, %v54_v2  ;;  %v30_v5 = vmul.f32 7.5, %v55_v3 }
   0xa   :  { %v58_v6 = vcvt.f32.s32 %v29_v4  ;;  %v56_v7 = vand.u32 2147483647, %v29_v4  ;;  %v66_v8 = vcvt.f32.s32 %v30_v5  ;;  %v61_v10 = vand.u32 2147483648, %v29_v4 }
   0xb   :  { %v64_v11 = vand.u32 2147483647, %v30_v5  ;;  %v69_v13 = vand.u32 2147483648, %v30_v5 }
   0xc   :  { %v59_v9 = vcvt.s32.f32 %v58_v6  ;;  %v67_v12 = vcvt.s32.f32 %v66_v8  ;;  %vm57_vm0 = vcmp.lt.f32.partialorder %v56_v7, 8388608.0 }
   0xd   :  { %vm65_vm1 = vcmp.lt.f32.partialorder %v64_v11, 8388608.0 }
   0xe   :  { %v60_v14 = vand.u32 2147483647, %v59_v9  ;;  %v68_v15 = vand.u32 2147483647, %v67_v12 }
  0x10   :  { %v62_v16 = vor.u32 %v61_v10, %v60_v14  ;;  %v70_v17 = vor.u32 %v69_v13, %v68_v15 }
  0x12   :  { %v63_v18 = vsel %vm57_vm0, %v62_v16, %v29_v4  ;;  %v71_v20 = vsel %vm65_vm1, %v70_v17, %v30_v5 }
  0x13   :  { %v33_v19 = vmul.f32 0.13333334, %v63_v18  ;;  %v34_v21 = vmul.f32 0.13333334, %v71_v20 }
  0x15   :  { %35 = vst [vmem:[#allocation5] sm:$0xff] %v33_v19 }
  0x16   :  { %36 = vst [vmem:[#allocation5 + $0x8] sm:$0xff] %v34_v21 }
  0x17   :  { %47 = dma.vmem_to_hbm [thread:$0]  %s43_s11, 256, %s45_s14, [#allocation4]  }
  0x18   :  { %124 = dma.done.wait [#allocation4], 256  }
  0x19   :  { %125 = vsyncadd [#allocation4], 4294967040 }
  0x1a   :  { %52 = vsyncpa [#allocation3], 1 }
  0x1b   :  { %53 = vsyncpa [#allocation4], 1 }

</bundles_post_ra>
